<compile_context>
chip_gen: v7x
topology: tpu7x:2x2x1
jax: 0.10.0
libtpu: 0.0.40
codegen_flags: <defaults>
</compile_context>

<pallas_src>
import functools

import jax
import jax.numpy as jnp
from jax.experimental import pallas as pl
from jax.experimental.pallas import tpu as pltpu


_SUB = 8  # batch rows packed per lane-dense row (8 rows x 16 features = 128 lanes)


def _round_up(x: int, m: int) -> int:
    return ((x + m - 1) // m) * m


def _predictor_kernel(zp_ref, w1e_ref, b1p_ref, alpha_ref, w2e_ref, b2p_ref, out_ref):
    # zp tile: (rt, 128) -- 8 batch rows per sublane-row, fully lane-dense.
    zp = zp_ref[...]

    # Layer 1 in the packed domain: hp[r, 8j+k] = h[8r+j, k]
    hp = jnp.dot(zp, w1e_ref[...], preferred_element_type=jnp.float32)   # (rt, 64)
    hp = hp + b1p_ref[...]                                               # (1, 64) broadcast

    # PReLU with a single shared alpha (scalar read from SMEM).
    alpha = alpha_ref[0, 0]
    hp = jnp.where(hp >= 0.0, hp, alpha * hp)

    # Layer 2 in the packed domain: op[r, 2j+p] = out[8r+j, p]
    op = jnp.dot(hp, w2e_ref[...], preferred_element_type=jnp.float32)   # (rt, 16)
    op = op + b2p_ref[...]                                               # (1, 16) broadcast

    out_ref[...] = op.astype(out_ref.dtype)


@functools.partial(jax.jit, static_argnames=("block_b",))
def ultra_predictor(z, w1, b1, alpha, w2, b2, *, block_b=65536):
    """UltraPredictor forward.

    z:     (B, D)  f32 input
    w1:    (H, D)  PyTorch layer-1 weight (out_features, in_features)
    b1:    (H,)    layer-1 bias
    alpha: scalar  PReLU weight (num_parameters=1)
    w2:    (P, H)  PyTorch layer-2 weight
    b2:    (P,)    layer-2 bias
    returns (B, P) f32

    block_b: batch rows per grid step.  Sweep 32768-131072 on real workloads
    (v5e ~32-64K, v6e/v7x up to ~128K within the 48 MiB VMEM limit below).
    """
    B, D = z.shape
    H = w1.shape[0]
    P = w2.shape[0]

    # Pad the batch only to a multiple of 128 (lane width), never to a multiple of bt.
    # For the common case (B already a multiple of 128) this is a no-op -> no extra copy.
    Bp = _round_up(B, 128)
    zf = z.astype(jnp.float32)
    if Bp != B:
        zf = jnp.pad(zf, ((0, Bp - B), (0, 0)))

    # Free (row-major bitcast) reshape: 8 batch rows per packed, lane-dense row.
    R = Bp // _SUB
    zp = jnp.reshape(zf, (R, _SUB * D))                                  # (Bp/8, 128)

    # Batch tile, rounded to a multiple of 128 so the (8, 128) tiling constraints hold.
    bt = min(_round_up(int(block_b), 128), Bp)
    rt = bt // _SUB
    num_tiles = pl.cdiv(R, rt)          # partial trailing block handled by Pallas

    # Tiny block-diagonal expanded weights (built once per call, resident in VMEM).
    eye = jnp.eye(_SUB, dtype=jnp.float32)
    w1e = jnp.kron(eye, jnp.transpose(w1).astype(jnp.float32))           # (8*D, 8*H) = (128, 64)
    w2e = jnp.kron(eye, jnp.transpose(w2).astype(jnp.float32))           # (8*H, 8*P) = (64, 16)
    b1p = jnp.reshape(jnp.tile(b1.astype(jnp.float32), _SUB), (1, _SUB * H))
    b2p = jnp.reshape(jnp.tile(b2.astype(jnp.float32), _SUB), (1, _SUB * P))
    alpha2 = jnp.reshape(jnp.asarray(alpha, jnp.float32), (1, 1))

    const = lambda i: (0, 0)

    outp = pl.pallas_call(
        _predictor_kernel,
        out_shape=jax.ShapeDtypeStruct((R, _SUB * P), jnp.float32),
        grid=(num_tiles,),
        in_specs=[
            pl.BlockSpec((rt, _SUB * D), lambda i: (i, 0)),              # packed z tile (pipelined)
            pl.BlockSpec((_SUB * D, _SUB * H), const),                   # W1e, resident
            pl.BlockSpec((1, _SUB * H), const),                          # b1 (packed), resident
            pl.BlockSpec(memory_space=pltpu.MemorySpace.SMEM),           # alpha scalar in SMEM
            pl.BlockSpec((_SUB * H, _SUB * P), const),                   # W2e, resident
            pl.BlockSpec((1, _SUB * P), const),                          # b2 (packed), resident
        ],
        out_specs=pl.BlockSpec((rt, _SUB * P), lambda i: (i, 0)),        # packed output tile
        compiler_params=pltpu.CompilerParams(
            dimension_semantics=("parallel",),       # megacore sharding on v7x
            vmem_limit_bytes=48 * 1024 * 1024,       # allow 64K-128K row tiles, all gens
        ),
        cost_estimate=pl.CostEstimate(
            flops=2 * B * (D * H + H * P),
            transcendentals=0,
            bytes_accessed=B * (D + P) * 4,
        ),
    )(zp, w1e, b1p, alpha2, w2e, b2p)

    # Free reshape back to the PyTorch (B, P) layout; drop any batch padding.
    return jnp.reshape(outp, (Bp, P))[:B]


def _reference(z, w1, b1, alpha, w2, b2):
    h = z @ w1.T + b1
    h = jnp.where(h >= 0.0, h, jnp.float32(alpha) * h)
    return h @ w2.T + b2


if __name__ == "__main__":
    latent_dim = 16
    n_predictions = 2
    hidden = latent_dim // 2          # n_layers = 2 -> one hidden layer of size 8

    key = jax.random.PRNGKey(0)
    k_z, k_z2, k_w1, k_b1, k_w2, k_b2 = jax.random.split(key, 6)

    # Deterministic synthetic parameters, PyTorch layout: weight = (out_features, in_features).
    w1 = jax.random.normal(k_w1, (hidden, latent_dim), dtype=jnp.float32) * 0.1
    b1 = jax.random.normal(k_b1, (hidden,), dtype=jnp.float32) * 0.1
    w2 = jax.random.normal(k_w2, (n_predictions, hidden), dtype=jnp.float32) * 0.1
    b2 = jax.random.normal(k_b2, (n_predictions,), dtype=jnp.float32) * 0.1
    alpha = jnp.float32(0.2)          # nn.PReLU(init=0.2), single shared parameter
    # TODO(synk): Dropout (p_do > 0) not implemented; the module default p_do=0.0 is a no-op.

    # Case 1: multi-tile grid (batch divisible by the tile) -> exercises pipelining.
    batch = 2048
    z = jax.random.normal(k_z, (batch, latent_dim), dtype=jnp.float32)
    out = jax.block_until_ready(ultra_predictor(z, w1, b1, alpha, w2, b2, block_b=512))
    ref = _reference(z, w1, b1, alpha, w2, b2)
    assert out.shape == (batch, n_predictions)
    assert jnp.allclose(out, ref, atol=1e-5, rtol=1e-5), "mismatch vs reference (batch=2048)"

    # Case 2: non-divisible grid -> exercises the partial trailing block (cdiv path).
    out_p = jax.block_until_ready(ultra_predictor(z, w1, b1, alpha, w2, b2, block_b=768))
    assert jnp.allclose(out_p, ref, atol=1e-5, rtol=1e-5), "mismatch vs reference (partial block)"

    # Case 3: ragged batch (not a multiple of 128) -> exercises the padding path.
    batch2 = 300
    z2 = jax.random.normal(k_z2, (batch2, latent_dim), dtype=jnp.float32)
    out2 = jax.block_until_ready(ultra_predictor(z2, w1, b1, alpha, w2, b2))
    ref2 = _reference(z2, w1, b1, alpha, w2, b2)
    assert out2.shape == (batch2, n_predictions)
    assert jnp.allclose(out2, ref2, atol=1e-5, rtol=1e-5), "mismatch vs reference (batch=300)"

    print("KERNEL_OK")
</pallas_src>

<mosaic_0001>
module attributes {stable_mosaic.version = 11 : i64} {
  func.func @_predictor_kernel(%arg0: i32, %arg1: memref<64x128xf32, #tpu.memory_space<vmem>>, %arg2: memref<128x64xf32, #tpu.memory_space<vmem>>, %arg3: memref<1x64xf32, #tpu.memory_space<vmem>>, %arg4: memref<1x1xf32, #tpu.memory_space<smem>>, %arg5: memref<64x16xf32, #tpu.memory_space<vmem>>, %arg6: memref<1x16xf32, #tpu.memory_space<vmem>>, %arg7: memref<64x16xf32, #tpu.memory_space<vmem>>) attributes {dimension_semantics = [#tpu.dimension_semantics<parallel>], iteration_bounds = array<i64: 4>, scalar_prefetch = 0 : i64, scratch_operands = 0 : i64, tpu.core_type = #tpu.core_type<tc>, window_params = [{transform_indices = @transform_0, window_bounds = array<i64: 64, 128>}, {pipeline_mode = #tpu.pipeline_mode<synchronous>, transform_indices = @transform_1, window_bounds = array<i64: 128, 64>}, {pipeline_mode = #tpu.pipeline_mode<synchronous>, transform_indices = @transform_2, window_bounds = array<i64: 1, 64>}, {transform_indices = @transform_3, window_bounds = array<i64: 1, 1>}, {pipeline_mode = #tpu.pipeline_mode<synchronous>, transform_indices = @transform_4, window_bounds = array<i64: 64, 16>}, {pipeline_mode = #tpu.pipeline_mode<synchronous>, transform_indices = @transform_5, window_bounds = array<i64: 1, 16>}, {transform_indices = @transform_6, window_bounds = array<i64: 64, 16>}]} {
    %c0 = arith.constant 0 : index
    %c0_0 = arith.constant 0 : index
    %0 = vector.load %arg1[%c0, %c0_0] : memref<64x128xf32, #tpu.memory_space<vmem>>, vector<64x128xf32>
    %c0_1 = arith.constant 0 : index
    %c0_2 = arith.constant 0 : index
    %1 = vector.load %arg2[%c0_1, %c0_2] : memref<128x64xf32, #tpu.memory_space<vmem>>, vector<128x64xf32>
    %cst = arith.constant dense<0.000000e+00> : vector<64x64xf32>
    %2 = tpu.matmul %0, %1, %cst {dimension_numbers = #tpu.dot_dimension_numbers<[1], [0], [0], [1], [0, 0, 1, 1], [], []>} : vector<64x128xf32>, vector<128x64xf32>, vector<64x64xf32> -> vector<64x64xf32>
    %c0_3 = arith.constant 0 : index
    %c0_4 = arith.constant 0 : index
    %3 = vector.load %arg3[%c0_3, %c0_4] : memref<1x64xf32, #tpu.memory_space<vmem>>, vector<1x64xf32>
    %4 = vector.broadcast %3 : vector<1x64xf32> to vector<64x64xf32>
    %5 = arith.addf %2, %4 : vector<64x64xf32>
    %c0_5 = arith.constant 0 : index
    %c0_6 = arith.constant 0 : index
    %6 = memref.load %arg4[%c0_5, %c0_6] : memref<1x1xf32, #tpu.memory_space<smem>>
    %cst_7 = arith.constant 0.000000e+00 : f32
    %7 = vector.broadcast %cst_7 : f32 to vector<64x64xf32>
    %8 = arith.cmpf oge, %5, %7 : vector<64x64xf32>
    %9 = vector.broadcast %6 : f32 to vector<64x64xf32>
    %10 = arith.mulf %9, %5 : vector<64x64xf32>
    %11 = arith.select %8, %5, %10 : vector<64x64xi1>, vector<64x64xf32>
    %c0_8 = arith.constant 0 : index
    %c0_9 = arith.constant 0 : index
    %12 = vector.load %arg5[%c0_8, %c0_9] : memref<64x16xf32, #tpu.memory_space<vmem>>, vector<64x16xf32>
    %cst_10 = arith.constant dense<0.000000e+00> : vector<64x16xf32>
    %13 = tpu.matmul %11, %12, %cst_10 {dimension_numbers = #tpu.dot_dimension_numbers<[1], [0], [0], [1], [0, 0, 1, 1], [], []>} : vector<64x64xf32>, vector<64x16xf32>, vector<64x16xf32> -> vector<64x16xf32>
    %c0_11 = arith.constant 0 : index
    %c0_12 = arith.constant 0 : index
    %14 = vector.load %arg6[%c0_11, %c0_12] : memref<1x16xf32, #tpu.memory_space<vmem>>, vector<1x16xf32>
    %15 = vector.broadcast %14 : vector<1x16xf32> to vector<64x16xf32>
    %16 = arith.addf %13, %15 : vector<64x16xf32>
    %c0_13 = arith.constant 0 : index
    %c0_14 = arith.constant 0 : index
    %17 = vector.load %arg7[%c0_13, %c0_14] : memref<64x16xf32, #tpu.memory_space<vmem>>, vector<64x16xf32>
    tpu.vector_store %arg7[%c0_13, %c0_14], %16 {strides = array<i32>} : memref<64x16xf32, #tpu.memory_space<vmem>>, vector<64x16xf32>,
    return
  }
  func.func @transform_0(%arg0: i32) -> (i32, i32) {
    %c0_i32 = arith.constant 0 : i32
    %c0_i32_0 = arith.constant 0 : i32
    return %arg0, %c0_i32 : i32, i32
  }
  func.func @transform_1(%arg0: i32) -> (i32, i32) {
    %c0_i32 = arith.constant 0 : i32
    %c0_i32_0 = arith.constant 0 : i32
    %c0_i32_1 = arith.constant 0 : i32
    return %c0_i32, %c0_i32_0 : i32, i32
  }
  func.func @transform_2(%arg0: i32) -> (i32, i32) {
    %c0_i32 = arith.constant 0 : i32
    %c0_i32_0 = arith.constant 0 : i32
    %c0_i32_1 = arith.constant 0 : i32
    return %c0_i32, %c0_i32_0 : i32, i32
  }
  func.func @transform_3(%arg0: i32) -> (i32, i32) {
    %c0_i32 = arith.constant 0 : i32
    %c0_i32_0 = arith.constant 0 : i32
    %c0_i32_1 = arith.constant 0 : i32
    return %c0_i32, %c0_i32_0 : i32, i32
  }
  func.func @transform_4(%arg0: i32) -> (i32, i32) {
    %c0_i32 = arith.constant 0 : i32
    %c0_i32_0 = arith.constant 0 : i32
    %c0_i32_1 = arith.constant 0 : i32
    return %c0_i32, %c0_i32_0 : i32, i32
  }
  func.func @transform_5(%arg0: i32) -> (i32, i32) {
    %c0_i32 = arith.constant 0 : i32
    %c0_i32_0 = arith.constant 0 : i32
    %c0_i32_1 = arith.constant 0 : i32
    return %c0_i32, %c0_i32_0 : i32, i32
  }
  func.func @transform_6(%arg0: i32) -> (i32, i32) {
    %c0_i32 = arith.constant 0 : i32
    %c0_i32_0 = arith.constant 0 : i32
    return %arg0, %c0_i32 : i32, i32
  }
}

</mosaic_0001>

<bundles_post_ra>
// kernel: tile.13
= control target key start
LH: loop header
LB: loop body
LE: loop exit
PB: predicated region body
PF: predicated region fallthrough
CT: control target
= control target key end

     0   :  { %s22_s0 = inlined_call_operand.vmem [shape: f32[8], index: 0, kind: input, shape index: {}]   ;;  %s23_s1 = inlined_call_operand.vmem [shape: f32[8,8], index: 1, kind: output, shape index: {}]  }
   0x1   :  { %v4_v0 = vld [vmem:[%s22_s0] ss:$0 sm:$0xff] }
   0x2   :  { %5 = vst [vmem:[%s23_s1] sm:$0xff] %v4_v0 }

// kernel: tile.14
= control target key start
LH: loop header
LB: loop body
LE: loop exit
PB: predicated region body
PF: predicated region fallthrough
CT: control target
= control target key end

     0   :  { %s67_s10 = smov 56   ;;  %s68_s11 = smov 40   ;;  %vm3_vm0 = vcmask 64512   ;;  %vm9_vm1 = vcmask 523712   ;;  %vm15_vm2 = vcmask 458112   ;;  %vm21_vm3 = vcmask 392512   ;;  %s111_s0 = inlined_call_operand.vmem [shape: f32[8,8], index: 0, kind: input, shape index: {}]   ;;  %s112_s1 = inlined_call_operand.vmem [shape: f32[1,64], index: 1, kind: output, shape index: {}]  }
   0x1   :  { %v53_v0 = vld [vmem:[%s111_s0 + $0x7] sm:$0x1]   ;;  %v55_v1 = vld [vmem:[%s111_s0 + $0x5] sm:$0x1]   ;;  %v54_v2 = vld [vmem:[%s111_s0 + $0x6] sm:$0x1]  }
   0x2   :  { %7 = vrot.lane.b32.xlu0 %v53_v0, %s67_s10  ;;  %19 = vrot.lane.b32.xlu1 %v55_v1, %s68_s11  ;;  %v56_v3 = vld [vmem:[%s111_s0 + $0x4] sm:$0x1]   ;;  %v2_v4 = vld [vmem:[%s111_s0] sm:$0x1]   ;;  %s69_s18 = smov 48   ;;  %s70_s19 = smov 32  }
   0x3   :  { %4 = vst.msk [vmem:[#allocation0] sm:$0x1] %vm3_vm0, %v2_v4   ;;  %v57_v5 = vld [vmem:[%s111_s0 + $0x3] sm:$0x1]   ;;  %v58_v6 = vld [vmem:[%s111_s0 + $0x2] sm:$0x1]  }
   0x4   :  { %s71_s24 = smov 24   ;;  %s72_s25 = smov 16   ;;  %v59_v7 = vld [vmem:[%s111_s0 + $0x1] sm:$0x1]   ;;  %vm27_vm4 = vcmask 326912   ;;  %vm33_vm5 = vcmask 261312  }
   0x5   :  { %s73_s0 = smov 8   ;;  %vm39_vm6 = vcmask 195712   ;;  %vm45_vm7 = vcmask 130112  }
   0x6   :  { %13 = vrot.lane.b32.xlu0 %v54_v2, %s69_s18  ;;  %25 = vrot.lane.b32.xlu1 %v56_v3, %s70_s19 }
   0xa   :  { %31 = vrot.lane.b32.xlu0 %v57_v5, %s71_s24  ;;  %37 = vrot.lane.b32.xlu1 %v58_v6, %s72_s25 }
   0xe   :  { %43 = vrot.lane.b32.xlu0 %v59_v7, %s73_s0 }
  0x74   :  { %v8_v8 = vpop.permute.xlu0 %7   ;;  %v20_v9 = vpop.permute.xlu1 %19  }
  0x75   :  { %10 = vst.msk [vmem:[#allocation0] sm:$0x1] %vm9_vm1, %v8_v8  }
  0x78   :  { %v14_v10 = vpop.permute.xlu0 %13   ;;  %v26_v11 = vpop.permute.xlu1 %25  }
  0x79   :  { %16 = vst.msk [vmem:[#allocation0] sm:$0x1] %vm15_vm2, %v14_v10  }
  0x7a   :  { %22 = vst.msk [vmem:[#allocation0] sm:$0x1] %vm21_vm3, %v20_v9  }
  0x7b   :  { %28 = vst.msk [vmem:[#allocation0] sm:$0x1] %vm27_vm4, %v26_v11  }
  0x7c   :  { %v32_v12 = vpop.permute.xlu0 %31   ;;  %v38_v13 = vpop.permute.xlu1 %37  }
  0x7d   :  { %34 = vst.msk [vmem:[#allocation0] sm:$0x1] %vm33_vm5, %v32_v12  }
  0x7e   :  { %40 = vst.msk [vmem:[#allocation0] sm:$0x1] %vm39_vm6, %v38_v13  }
  0x80   :  { %v44_v14 = vpop.permute.xlu0 %43  }
  0x81   :  { %46 = vst.msk [vmem:[#allocation0] sm:$0x1] %vm45_vm7, %v44_v14  }
  0x88   :  { %v50_v15 = vld [vmem:[#allocation0] sm:$0x1] }
  0x89   :  { %52 = vst [vmem:[%s112_s1] sm:$0x1] %v50_v15 }

// kernel: tile.18
= control target key start
LH: loop header
LB: loop body
LE: loop exit
PB: predicated region body
PF: predicated region fallthrough
CT: control target
= control target key end

     0   :  { %s22_s0 = inlined_call_operand.vmem [shape: f32[2], index: 0, kind: input, shape index: {}]   ;;  %s23_s1 = inlined_call_operand.vmem [shape: f32[8,2], index: 1, kind: output, shape index: {}]  }
   0x1   :  { %v4_v0 = vld [vmem:[%s22_s0] ss:$0 sm:$0xff] }
   0x2   :  { %5 = vst [vmem:[%s23_s1] sm:$0xff] %v4_v0 }

// kernel: tile.19
= control target key start
LH: loop header
LB: loop body
LE: loop exit
PB: predicated region body
PF: predicated region fallthrough
CT: control target
= control target key end

     0   :  { %s67_s10 = smov 14   ;;  %s68_s11 = smov 10   ;;  %vm3_vm0 = vcmask 15360   ;;  %vm9_vm1 = vcmask 130160   ;;  %vm15_vm2 = vcmask 113760   ;;  %vm21_vm3 = vcmask 97360   ;;  %s111_s0 = inlined_call_operand.vmem [shape: f32[8,2], index: 0, kind: input, shape index: {}]   ;;  %s112_s1 = inlined_call_operand.vmem [shape: f32[1,16], index: 1, kind: output, shape index: {}]  }
   0x1   :  { %v53_v0 = vld [vmem:[%s111_s0 + $0x7] sm:$0x1]   ;;  %v55_v1 = vld [vmem:[%s111_s0 + $0x5] sm:$0x1]   ;;  %v54_v2 = vld [vmem:[%s111_s0 + $0x6] sm:$0x1]  }
   0x2   :  { %7 = vrot.lane.b32.xlu0 %v53_v0, %s67_s10  ;;  %19 = vrot.lane.b32.xlu1 %v55_v1, %s68_s11  ;;  %v56_v3 = vld [vmem:[%s111_s0 + $0x4] sm:$0x1]   ;;  %v2_v4 = vld [vmem:[%s111_s0] sm:$0x1]   ;;  %s69_s18 = smov 12   ;;  %s70_s19 = smov 8  }
   0x3   :  { %4 = vst.msk [vmem:[#allocation0] sm:$0x1] %vm3_vm0, %v2_v4   ;;  %v57_v5 = vld [vmem:[%s111_s0 + $0x3] sm:$0x1]   ;;  %v58_v6 = vld [vmem:[%s111_s0 + $0x2] sm:$0x1]  }
   0x4   :  { %s71_s24 = smov 6   ;;  %s72_s25 = smov 4   ;;  %v59_v7 = vld [vmem:[%s111_s0 + $0x1] sm:$0x1]   ;;  %vm27_vm4 = vcmask 80960   ;;  %vm33_vm5 = vcmask 64560  }
   0x5   :  { %s73_s0 = smov 2   ;;  %vm39_vm6 = vcmask 48160   ;;  %vm45_vm7 = vcmask 31760  }
   0x6   :  { %13 = vrot.lane.b32.xlu0 %v54_v2, %s69_s18  ;;  %25 = vrot.lane.b32.xlu1 %v56_v3, %s70_s19 }
   0xa   :  { %31 = vrot.lane.b32.xlu0 %v57_v5, %s71_s24  ;;  %37 = vrot.lane.b32.xlu1 %v58_v6, %s72_s25 }
   0xe   :  { %43 = vrot.lane.b32.xlu0 %v59_v7, %s73_s0 }
  0x74   :  { %v8_v8 = vpop.permute.xlu0 %7   ;;  %v20_v9 = vpop.permute.xlu1 %19  }
  0x75   :  { %10 = vst.msk [vmem:[#allocation0] sm:$0x1] %vm9_vm1, %v8_v8  }
  0x78   :  { %v14_v10 = vpop.permute.xlu0 %13   ;;  %v26_v11 = vpop.permute.xlu1 %25  }
  0x79   :  { %16 = vst.msk [vmem:[#allocation0] sm:$0x1] %vm15_vm2, %v14_v10  }
  0x7a   :  { %22 = vst.msk [vmem:[#allocation0] sm:$0x1] %vm21_vm3, %v20_v9  }
  0x7b   :  { %28 = vst.msk [vmem:[#allocation0] sm:$0x1] %vm27_vm4, %v26_v11  }
  0x7c   :  { %v32_v12 = vpop.permute.xlu0 %31   ;;  %v38_v13 = vpop.permute.xlu1 %37  }
  0x7d   :  { %34 = vst.msk [vmem:[#allocation0] sm:$0x1] %vm33_vm5, %v32_v12  }
  0x7e   :  { %40 = vst.msk [vmem:[#allocation0] sm:$0x1] %vm39_vm6, %v38_v13  }
  0x80   :  { %v44_v14 = vpop.permute.xlu0 %43  }
  0x81   :  { %46 = vst.msk [vmem:[#allocation0] sm:$0x1] %vm45_vm7, %v44_v14  }
  0x88   :  { %v50_v15 = vld [vmem:[#allocation0] sm:$0x1] }
  0x89   :  { %52 = vst [vmem:[%s112_s1] sm:$0x1] %v50_v15 }

// kernel: ultra_predictor.1
= control target key start
LH: loop header
LB: loop body
LE: loop exit
PB: predicated region body
PF: predicated region fallthrough
CT: control target
= control target key end

     0   :  { %s863_s23 = smov 0   ;;  %s991_s0 = inlined_call_operand.vmem [shape: f32[256,128], index: 0, kind: input, shape index: {}]   ;;  %s992_s1 = inlined_call_operand.vmem [shape: f32[128,64], index: 1, kind: input, shape index: {}]   ;;  %s993_s2 = inlined_call_operand.vmem [shape: f32[1,64], index: 2, kind: input, shape index: {}]   ;;  %s994_s3 = inlined_call_operand.<no memory space> [shape: f32[1,1], index: 3, kind: input, shape index: {}]   ;;  %s995_s4 = inlined_call_operand.vmem [shape: f32[64,16], index: 4, kind: input, shape index: {}]   ;;  %s996_s5 = inlined_call_operand.vmem [shape: f32[1,16], index: 5, kind: input, shape index: {}]   ;;  %s997_s6 = inlined_call_operand.vmem [shape: f32[256,16], index: 6, kind: output, shape index: {}]  }
   0x1   :  { %11 = sst [smem:[#allocation2]] %s994_s3 }
   0x2 LB: > { %s628_s24 = sadd.s32 4294967295, %s823_s23   ;;  %p632_p0 = scmp.ge.s32.totalorder %s823_s23, 1  ;;  %s823_s23 = sphi %s863_s23, %s17_s23  }
   0x3   : > { %p214_p1 = scmp.lt.s32.totalorder %s823_s23, 5 }
   0x5   : > { %p215_p2 = pnand %p632_p0, %p214_p1 }
   0x6   : > { %v264_v0 = vld [vmem:[%s992_s1] sm:$0xff] (!%p215_p2)  ;;  %v265_v1 = vld [vmem:[%s992_s1 + $0x8] sm:$0xff] (!%p215_p2)  ;;  %v266_v2 = vld [vmem:[%s992_s1 + $0x10] sm:$0xff] (!%p215_p2)  ;;  %s633_s30 = sshll.u32 (!%p215_p2), %s628_s24, 3  ;;  %vm433_vm2 = vcmask (!%p215_p2), 523264   ;;  %vm563_vm9 = vcmask (!%p215_p2), 130048  }
   0x7   : > { %218 = sbr.rel (%p215_p2) target bundleno = 488 (0x1e8), region = 44  ;;  %v761_v3 = vpack.c.bf16 (!%p215_p2), %v265_v1, %v264_v0  ;;  %v267_v4 = vld [vmem:[%s992_s1 + $0x18] sm:$0xff] (!%p215_p2)  ;;  %p245_p3 = scmp.lt.s32.totalorder (!%p215_p2), %s633_s30, 31  ;;  %v268_v6 = vld [vmem:[%s992_s1 + $0x20] sm:$0xff] (!%p215_p2)  ;;  %v269_v7 = vld [vmem:[%s992_s1 + $0x28] sm:$0xff] (!%p215_p2) }
   0x8   : > { %v765_v5 = vpack.c.bf16 (!%p215_p2), %v267_v4, %v266_v2  ;;  %v769_v8 = vpack.c.bf16 (!%p215_p2), %v269_v7, %v268_v6  ;;  %v270_v9 = vld [vmem:[%s992_s1 + $0x30] sm:$0xff] (!%p215_p2)  ;;  %v418_v10 = vld [vmem:[%s995_s4] sm:$0xff] (!%p215_p2)  ;;  %v419_v11 = vld [vmem:[%s995_s4 + $0x8] sm:$0xff] (!%p215_p2) }
   0x9   : > { %762 = vmatprep.subr.bf16.mxu0 (!%p215_p2), %v761_v3  ;;  %v271_v12 = vld [vmem:[%s992_s1 + $0x38] sm:$0xff] (!%p215_p2)  ;;  %v793_v13 = vpack.c.bf16 (!%p215_p2), %v419_v11, %v418_v10  ;;  %v420_v14 = vld [vmem:[%s995_s4 + $0x10] sm:$0xff] (!%p215_p2)  ;;  %v272_v19 = vld [vmem:[%s992_s1 + $0x40] sm:$0xff] (!%p215_p2) }
   0xa   : > { %764 = vmatpush3.bf16.msra.mxu0 (!%p215_p2), %v761_v3  ;;  %v421_v15 = vld [vmem:[%s995_s4 + $0x18] sm:$0xff] (!%p215_p2)  ;;  %v773_v18 = vpack.c.bf16 (!%p215_p2), %v271_v12, %v270_v9  ;;  %v273_v20 = vld [vmem:[%s992_s1 + $0x48] sm:$0xff] (!%p215_p2)  ;;  %v274_v22 = vld [vmem:[%s992_s1 + $0x50] sm:$0xff] (!%p215_p2) }
   0xb   : > { %766 = vmatprep.subr.bf16.mxu0 (!%p215_p2), %v765_v5  ;;  %v797_v17 = vpack.c.bf16 (!%p215_p2), %v421_v15, %v420_v14  ;;  %794 = vmatprep.subr.bf16.mxu1 (!%p215_p2), %v793_v13  ;;  %v777_v21 = vpack.c.bf16 (!%p215_p2), %v273_v20, %v272_v19  ;;  %v275_v23 = vld [vmem:[%s992_s1 + $0x58] sm:$0xff] (!%p215_p2)  ;;  %v276_v25 = vld [vmem:[%s992_s1 + $0x60] sm:$0xff] (!%p215_p2)  ;;  %v277_v26 = vld [vmem:[%s992_s1 + $0x68] sm:$0xff] (!%p215_p2) }
   0xc   : > { %796 = vmatpush3.bf16.msra.mxu1 (!%p215_p2), %v793_v13  ;;  %v781_v24 = vpack.c.bf16 (!%p215_p2), %v275_v23, %v274_v22  ;;  %v785_v27 = vpack.c.bf16 (!%p215_p2), %v277_v26, %v276_v25  ;;  %v278_v28 = vld [vmem:[%s992_s1 + $0x70] sm:$0xff] (!%p215_p2)  ;;  %v279_v29 = vld [vmem:[%s992_s1 + $0x78] sm:$0xff] (!%p215_p2)  ;;  %v422_v38 = vld [vmem:[%s995_s4 + $0x20] sm:$0xff] (!%p215_p2) }
   0xd   : > { %798 = vmatprep.subr.bf16.mxu1 (!%p215_p2), %v797_v17  ;;  %v789_v30 = vpack.c.bf16 (!%p215_p2), %v279_v29, %v278_v28  ;;  %v423_v39 = vld [vmem:[%s995_s4 + $0x28] sm:$0xff] (!%p215_p2)  ;;  %v424_v41 = vld [vmem:[%s995_s4 + $0x30] sm:$0xff] (!%p215_p2)  ;;  %v425_v42 = vld [vmem:[%s995_s4 + $0x38] sm:$0xff] (!%p215_p2) }
   0xe   : > { %s999_s30 = smov (!%p245_p3, %s633_s30), 31  ;;  %768 = vmatpush3.bf16.msra.mxu0 %v765_v5  ;;  %v801_v40 = vpack.c.bf16 %v423_v39, %v422_v38  ;;  %v805_v43 = vpack.c.bf16 %v425_v42, %v424_v41  ;;  %v637_v44 = vld [vmem:[%s993_s2] ss:$0 sm:$0xff] }
   0xf   : > { %s634_s15 = sshll.u32 %s999_s30, 3  ;;  %770 = vmatprep.subr.bf16.mxu0 %v769_v8  ;;  %v638_v14 = vld [vmem:[%s996_s5] ss:$0 sm:$0xff] }
  0x10   : > { %s909_s25 = scalar_lea.vmem %s991_s0, %s634_s15  ;;  %800 = vmatpush3.bf16.msra.mxu1 %v797_v17  ;;  %s254_s16 = scalar_lea.vmem %s997_s6, %s634_s15 }
  0x11   : > { %v256_v16 = vld [vmem:[%s909_s25] sm:$0xff]  ;;  %v257_v31 = vld [vmem:[%s909_s25 + $0x8] sm:$0xff]  ;;  %v258_v32 = vld [vmem:[%s909_s25 + $0x10] sm:$0xff]  ;;  %802 = vmatprep.subr.bf16.mxu1 %v801_v40 }
  0x12   : > { %721 = vmatprep.mubr.f32.mxu0 %v256_v16  ;;  %772 = vmatpush3.bf16.msra.mxu0 %v769_v8  ;;  %v259_v33 = vld [vmem:[%s909_s25 + $0x18] sm:$0xff]  ;;  %v260_v34 = vld [vmem:[%s909_s25 + $0x20] sm:$0xff]  ;;  %v261_v35 = vld [vmem:[%s909_s25 + $0x28] sm:$0xff] }
  0x13   : > { %774 = vmatprep.subr.bf16.mxu0 %v773_v18  ;;  %v262_v36 = vld [vmem:[%s909_s25 + $0x30] sm:$0xff]  ;;  %v263_v37 = vld [vmem:[%s909_s25 + $0x38] sm:$0xff]  ;;  %s392_s25 = sld [smem:[#allocation2]] }
  0x14   : > { %804 = vmatpush3.bf16.msra.mxu1 %v801_v40 }
  0x15   : > { %806 = vmatprep.subr.bf16.mxu1 %v805_v43 }
  0x16   : > { %776 = vmatpush3.bf16.msra.mxu0 %v773_v18 }
  0x17   : > { %778 = vmatprep.subr.bf16.mxu0 %v777_v21 }
  0x18   : > { %808 = vmatpush3.bf16.msra.mxu1 %v805_v43 }
  0x19   : > { %v401_v46 = vstv %s392_s25 }
  0x1a   : > { %780 = vmatpush3.bf16.msra.mxu0 %v777_v21 }
  0x1b   : > { %782 = vmatprep.subr.bf16.mxu0 %v781_v24 }
  0x1e   : > { %784 = vmatpush3.bf16.msra.mxu0 %v781_v24 }
  0x1f   : > { %786 = vmatprep.subr.bf16.mxu0 %v785_v27 }
  0x22   : > { %788 = vmatpush3.bf16.msra.mxu0 %v785_v27 }
  0x23   : > { %790 = vmatprep.subr.bf16.mxu0 %v789_v30 }
  0x26   : > { %792 = vmatpush3.bf16.msra.mxu0 %v789_v30 }
  0x29   : > { %722 = vmatmul.mubr.f32.vlgmr.msra.gmra.mrb[0].mxu0 %v257_v31 }
  0x2a   : > { %724 = vmatprep.mubr.f32.mxu0 %v258_v32 }
  0x2d   : > { %725 = vmatmul.mubr.f32.gmra.mrb[2].mxu0 %v259_v33 }
  0x2e   : > { %727 = vmatprep.mubr.f32.mxu0 %v260_v34 }
  0x31   : > { %728 = vmatmul.mubr.f32.gmra.mrb[4].mxu0 %v261_v35 }
  0x32   : > { %730 = vmatprep.mubr.f32.mxu0 %v262_v36 }
  0x35   : > { %731 = vmatmul.mubr.f32.gmra.mrb[6].mxu0 %v263_v37 }
  0xfc   : > { %v723_v45 = vpop.f32.mrb[0].mxu0 }
  0xfd   : > { %v359_v47 = vadd.f32 %v723_v45, %v637_v44  ;;  %v353_v48 = vpop.f32.mrb[1].mxu0 }
  0xfe   : > { %v354_v49 = vadd.f32 %v637_v44, %v353_v48 }
  0xff   : > { %v403_v50 = vmul.f32 %v401_v46, %v359_v47  ;;  %vm394_vm0 = vcmp.ge.f32.partialorder %v359_v47, 0.0 }
 0x100   : > { %v726_v51 = vpop.f32.mrb[2].mxu0  ;;  %vm393_vm1 = vcmp.ge.f32.partialorder %v354_v49, 0.0  ;;  %v402_v52 = vmul.f32 %v401_v46, %v354_v49 }
 0x101   : > { %v369_v53 = vadd.f32 %v726_v51, %v637_v44  ;;  %v363_v54 = vpop.f32.mrb[3].mxu0  ;;  %v411_v58 = vsel %vm394_vm0, %v359_v47, %v403_v50 }
 0x102   : > { %v364_v55 = vadd.f32 %v637_v44, %v363_v54  ;;  %v410_v56 = vsel %vm393_vm1, %v354_v49, %v402_v52 }
 0x103   : > { %v405_v57 = vmul.f32 %v401_v46, %v369_v53  ;;  %749 = vmatprep.mubr.msk.f32.mxu1 %vm433_vm2, %v410_v56  ;;  %vm396_vm3 = vcmp.ge.f32.partialorder %v369_v53, 0.0 }
 0x104   : > { %vm395_vm4 = vcmp.ge.f32.partialorder %v364_v55, 0.0  ;;  %v404_v59 = vmul.f32 %v401_v46, %v364_v55  ;;  %v729_v60 = vpop.f32.mrb[4].mxu0  ;;  %750 = vmatmul.mubr.msk.f32.vlgmr.msra.gmra.mrb[0].mxu1 %vm433_vm2, %v411_v58 }
 0x105   : > { %v379_v61 = vadd.f32 %v729_v60, %v637_v44  ;;  %v373_v62 = vpop.f32.mrb[5].mxu0  ;;  %v413_v2 = vsel %vm396_vm3, %v369_v53, %v405_v57 }
 0x106   : > { %v374_v63 = vadd.f32 %v637_v44, %v373_v62  ;;  %v412_v0 = vsel %vm395_vm4, %v364_v55, %v404_v59 }
 0x107   : > { %v407_v1 = vmul.f32 %v401_v46, %v379_v61  ;;  %752 = vmatprep.mubr.msk.f32.mxu1 %vm433_vm2, %v412_v0  ;;  %vm398_vm5 = vcmp.ge.f32.partialorder %v379_v61, 0.0 }
 0x108   : > { %vm397_vm6 = vcmp.ge.f32.partialorder %v374_v63, 0.0  ;;  %v406_v3 = vmul.f32 %v401_v46, %v374_v63  ;;  %v732_v4 = vpop.f32.mrb[6].mxu0  ;;  %753 = vmatmul.mubr.msk.f32.gmra.mrb[2].mxu1 %vm433_vm2, %v413_v2 }
 0x109   : > { %v389_v5 = vadd.f32 %v732_v4, %v637_v44  ;;  %v383_v6 = vpop.f32.mrb[7].mxu0  ;;  %v415_v10 = vsel %vm398_vm5, %v379_v61, %v407_v1 }
 0x10a   : > { %v384_v7 = vadd.f32 %v637_v44, %v383_v6  ;;  %v414_v8 = vsel %vm397_vm6, %v374_v63, %v406_v3 }
 0x10b   : > { %v409_v9 = vmul.f32 %v401_v46, %v389_v5  ;;  %755 = vmatprep.mubr.msk.f32.mxu1 %vm433_vm2, %v414_v8  ;;  %vm400_vm7 = vcmp.ge.f32.partialorder %v389_v5, 0.0 }
 0x10c   : > { %vm399_vm8 = vcmp.ge.f32.partialorder %v384_v7, 0.0  ;;  %v408_v11 = vmul.f32 %v401_v46, %v384_v7  ;;  %756 = vmatmul.mubr.msk.f32.gmra.mrb[4].mxu1 %vm433_vm2, %v415_v10 }
 0x10d   : > { %v417_v13 = vsel %vm400_vm7, %v389_v5, %v409_v9 }
 0x10e   : > { %v416_v12 = vsel %vm399_vm8, %v384_v7, %v408_v11 }
 0x10f   : > { %758 = vmatprep.mubr.msk.f32.mxu1 %vm433_vm2, %v416_v12 }
 0x110   : > { %759 = vmatmul.mubr.msk.f32.gmra.mrb[6].mxu1 %vm433_vm2, %v417_v13 }
 0x1d7   : > { %v751_v15 = vpop.f32.mrb[0].mxu1 }
 0x1d8   : > { %v530_v16 = vadd.f32 %v751_v15, %v638_v14  ;;  %v524_v17 = vpop.f32.mrb[1].mxu1 }
 0x1d9   : > { %v525_v18 = vadd.f32 %v638_v14, %v524_v17 }
 0x1da   : > { %565 = vst.msk [vmem:[%s254_s16 + $0x8] sm:$0xff] %vm563_vm9, %v530_v16 }
 0x1db   : > { %564 = vst.msk [vmem:[%s254_s16] sm:$0xff] %vm563_vm9, %v525_v18  ;;  %v754_v19 = vpop.f32.mrb[2].mxu1 }
 0x1dc   : > { %v540_v20 = vadd.f32 %v754_v19, %v638_v14  ;;  %v534_v21 = vpop.f32.mrb[3].mxu1 }
 0x1dd   : > { %v535_v22 = vadd.f32 %v638_v14, %v534_v21 }
 0x1de   : > { %567 = vst.msk [vmem:[%s254_s16 + $0x18] sm:$0xff] %vm563_vm9, %v540_v20 }
 0x1df   : > { %566 = vst.msk [vmem:[%s254_s16 + $0x10] sm:$0xff] %vm563_vm9, %v535_v22  ;;  %v757_v23 = vpop.f32.mrb[4].mxu1 }
 0x1e0   : > { %v550_v24 = vadd.f32 %v757_v23, %v638_v14  ;;  %v544_v25 = vpop.f32.mrb[5].mxu1 }
 0x1e1   : > { %v545_v26 = vadd.f32 %v638_v14, %v544_v25 }
 0x1e2   : > { %569 = vst.msk [vmem:[%s254_s16 + $0x28] sm:$0xff] %vm563_vm9, %v550_v24 }
 0x1e3   : > { %568 = vst.msk [vmem:[%s254_s16 + $0x20] sm:$0xff] %vm563_vm9, %v545_v26  ;;  %v760_v27 = vpop.f32.mrb[6].mxu1 }
 0x1e4   : > { %v560_v28 = vadd.f32 %v760_v27, %v638_v14  ;;  %v554_v29 = vpop.f32.mrb[7].mxu1 }
 0x1e5   : > { %v555_v30 = vadd.f32 %v638_v14, %v554_v29 }
 0x1e6   : > { %571 = vst.msk [vmem:[%s254_s16 + $0x38] sm:$0xff] %vm563_vm9, %v560_v28 }
 0x1e7   : > { %570 = vst.msk [vmem:[%s254_s16 + $0x30] sm:$0xff] %vm563_vm9, %v555_v30 }
 0x1e8 PF: > { %s17_s23 = sadd.s32 1, %s823_s23  }
 0x1e9   : > { %p14_p4 = scmp.ge.s32.totalorder %s17_s23, 6  }
 0x1eb   :  { %16 = sbr.rel (!%p14_p4) target bundleno = 2 (0x2), region = 74 }

</bundles_post_ra>
